<compile_context>
chip_gen: v7x
topology: tpu7x:2x2x1
jax: 0.10.0
libtpu: 0.0.40
codegen_flags: <defaults>
</compile_context>

<pallas_src>
import jax
import jax.numpy as jnp
from jax.experimental import pallas as pl
from jax.experimental.pallas import tpu as pltpu


def _mul_conv1x1_kernel(x_ref, s_ref, w_ref, o_ref):
    # x_ref: (1, K, HW)   one image, channels-major (straight NCHW reshape)
    # s_ref: (1, 1, K)    per-(batch, channel) scale
    # w_ref: (TN, K)      C_out tile of the 1x1 conv weight (no transpose)
    # o_ref: (1, TN, HW)
    # Fold the scale into the weight (smaller operand than x), then do the
    # 1x1 conv as a bf16 MXU matmul with f32 accumulation.
    w_scaled = (w_ref[...] * s_ref[0, :, :]).astype(jnp.bfloat16)
    x_bf16 = x_ref[0, :, :].astype(jnp.bfloat16)
    o_ref[0, :, :] = jnp.dot(w_scaled, x_bf16,
                             preferred_element_type=jnp.float32)


@jax.jit
def mul_conv1x1(x_nchw, scale_nc11, weight_oi11):
    """Conv2d(C_in->C_out, 1x1, bias=False)(x * scale), matching the torch module."""
    n, c_in, h, w = x_nchw.shape
    c_out = weight_oi11.shape[0]
    hw = h * w

    # Transpose-free operand construction (all reshapes are metadata-only).
    x_rhs = x_nchw.reshape(n, c_in, hw)          # (N, K, HW)
    s = scale_nc11.reshape(n, 1, c_in)           # (N, 1, K)
    w_lhs = weight_oi11.reshape(c_out, c_in)     # (C_out, K)

    # 2-way split over C_out (sublane-aligned) so v7x can use both TensorCores;
    # falls back to a single block if C_out/2 would not be a multiple of 8.
    tn = c_out // 2 if (c_out % 16 == 0) else c_out
    n_co = c_out // tn

    out = pl.pallas_call(
        _mul_conv1x1_kernel,
        out_shape=jax.ShapeDtypeStruct((n, c_out, hw), jnp.float32),
        grid=(n, n_co),
        in_specs=[
            pl.BlockSpec((1, c_in, hw), lambda b, i: (b, 0, 0)),
            pl.BlockSpec((1, 1, c_in), lambda b, i: (b, 0, 0)),
            pl.BlockSpec((tn, c_in), lambda b, i: (i, 0)),
        ],
        out_specs=pl.BlockSpec((1, tn, hw), lambda b, i: (b, i, 0)),
        compiler_params=pltpu.CompilerParams(
            dimension_semantics=("parallel", "parallel")),
        cost_estimate=pl.CostEstimate(
            flops=2 * n * c_out * c_in * hw,
            transcendentals=0,
            bytes_accessed=4 * (n * c_in * hw + n * c_in
                                + c_out * c_in + n * c_out * hw)),
    )(x_rhs, s, w_lhs)

    # Straight back to NCHW — no transpose needed in this layout.
    return out.reshape(n, c_out, h, w)


if __name__ == "__main__":
    key = jax.random.PRNGKey(0)
    k1, k2, k3 = jax.random.split(key, 3)

    # Shapes implied by the module's forward.
    N, C_IN, H, W = 1, 960, 14, 14
    C_OUT = 160

    x402 = jax.random.normal(k1, (N, C_IN, H, W), dtype=jnp.float32)
    x407 = jax.random.normal(k2, (N, C_IN, 1, 1), dtype=jnp.float32)
    # Deterministic conv weight (Conv2d(960, 160, 1, bias=False) shape).
    conv_w = jax.random.normal(k3, (C_OUT, C_IN, 1, 1), dtype=jnp.float32) * 0.02

    y = mul_conv1x1(x402, x407, conv_w)
    jax.block_until_ready(y)

    # Correctness check against a pure-JAX f32 reference.  Tolerance is set for
    # bf16 MXU inputs with f32 accumulation over K=960.
    ref = jnp.einsum("nchw,oc->nohw", x402 * x407, conv_w.reshape(C_OUT, C_IN))
    assert y.shape == (N, C_OUT, H, W), y.shape
    assert jnp.allclose(y, ref, atol=2e-2, rtol=2e-2), float(jnp.max(jnp.abs(y - ref)))

    print("KERNEL_OK")
</pallas_src>

<mosaic_0001>
module attributes {stable_mosaic.version = 11 : i64} {
  func.func @_mul_conv1x1_kernel(%arg0: i32, %arg1: i32, %arg2: memref<1x960x196xf32, #tpu.memory_space<vmem>>, %arg3: memref<1x1x960xf32, #tpu.memory_space<vmem>>, %arg4: memref<80x960xf32, #tpu.memory_space<vmem>>, %arg5: memref<1x80x196xf32, #tpu.memory_space<vmem>>) attributes {dimension_semantics = [#tpu.dimension_semantics<parallel>, #tpu.dimension_semantics<parallel>], iteration_bounds = array<i64: 1, 2>, scalar_prefetch = 0 : i64, scratch_operands = 0 : i64, tpu.core_type = #tpu.core_type<tc>, window_params = [{transform_indices = @transform_0, window_bounds = array<i64: 1, 960, 196>}, {transform_indices = @transform_1, window_bounds = array<i64: 1, 1, 960>}, {transform_indices = @transform_2, window_bounds = array<i64: 80, 960>}, {transform_indices = @transform_3, window_bounds = array<i64: 1, 80, 196>}]} {
    %c0 = arith.constant 0 : index
    %c0_0 = arith.constant 0 : index
    %0 = vector.load %arg4[%c0, %c0_0] : memref<80x960xf32, #tpu.memory_space<vmem>>, vector<80x960xf32>
    %c0_1 = arith.constant 0 : index
    %c0_2 = arith.constant 0 : index
    %c0_3 = arith.constant 0 : index
    %1 = vector.load %arg3[%c0_1, %c0_2, %c0_3] : memref<1x1x960xf32, #tpu.memory_space<vmem>>, vector<1x1x960xf32>
    %2 = vector.shape_cast %1 : vector<1x1x960xf32> to vector<1x960xf32>
    %3 = vector.broadcast %2 : vector<1x960xf32> to vector<80x960xf32>
    %4 = arith.mulf %0, %3 : vector<80x960xf32>
    %5 = arith.truncf %4 : vector<80x960xf32> to vector<80x960xbf16>
    %c0_4 = arith.constant 0 : index
    %c0_5 = arith.constant 0 : index
    %c0_6 = arith.constant 0 : index
    %6 = vector.load %arg2[%c0_4, %c0_5, %c0_6] : memref<1x960x196xf32, #tpu.memory_space<vmem>>, vector<1x960x196xf32>
    %7 = vector.shape_cast %6 : vector<1x960x196xf32> to vector<960x196xf32>
    %8 = arith.truncf %7 : vector<960x196xf32> to vector<960x196xbf16>
    %cst = arith.constant dense<0.000000e+00> : vector<80x196xf32>
    %9 = tpu.matmul %5, %8, %cst {dimension_numbers = #tpu.dot_dimension_numbers<[1], [0], [0], [1], [0, 0, 1, 1], [], []>} : vector<80x960xbf16>, vector<960x196xbf16>, vector<80x196xf32> -> vector<80x196xf32>
    %c0_7 = arith.constant 0 : index
    %c0_8 = arith.constant 0 : index
    %c0_9 = arith.constant 0 : index
    %10 = vector.load %arg5[%c0_7, %c0_8, %c0_9] : memref<1x80x196xf32, #tpu.memory_space<vmem>>, vector<1x80x196xf32>
    %11 = vector.shape_cast %10 : vector<1x80x196xf32> to vector<80x196xf32>
    %12 = vector.shape_cast %9 : vector<80x196xf32> to vector<1x80x196xf32>
    tpu.vector_store %arg5[%c0_7, %c0_8, %c0_9], %12 {strides = array<i32>} : memref<1x80x196xf32, #tpu.memory_space<vmem>>, vector<1x80x196xf32>,
    return
  }
  func.func @transform_0(%arg0: i32, %arg1: i32) -> (i32, i32, i32) {
    %c0_i32 = arith.constant 0 : i32
    %c0_i32_0 = arith.constant 0 : i32
    %c0_i32_1 = arith.constant 0 : i32
    return %arg0, %c0_i32, %c0_i32_0 : i32, i32, i32
  }
  func.func @transform_1(%arg0: i32, %arg1: i32) -> (i32, i32, i32) {
    %c0_i32 = arith.constant 0 : i32
    %c0_i32_0 = arith.constant 0 : i32
    %c0_i32_1 = arith.constant 0 : i32
    return %arg0, %c0_i32, %c0_i32_0 : i32, i32, i32
  }
  func.func @transform_2(%arg0: i32, %arg1: i32) -> (i32, i32) {
    %c0_i32 = arith.constant 0 : i32
    %c0_i32_0 = arith.constant 0 : i32
    return %arg1, %c0_i32 : i32, i32
  }
  func.func @transform_3(%arg0: i32, %arg1: i32) -> (i32, i32, i32) {
    %c0_i32 = arith.constant 0 : i32
    %c0_i32_0 = arith.constant 0 : i32
    return %arg0, %arg1, %c0_i32 : i32, i32, i32
  }
}

</mosaic_0001>

<bundles_post_ra>
// kernel: mul_conv1x1.1
= control target key start
LH: loop header
LB: loop body
LE: loop exit
PB: predicated region body
PF: predicated region fallthrough
CT: control target
= control target key end

     0   :  { %s1475_s12 = smov 0   ;;  %s1477_s13 = smov 0   ;;  %s2723_s0 = inlined_call_operand.vmem [shape: f32[1,960,196], index: 0, kind: input, shape index: {}]   ;;  %s2724_s1 = inlined_call_operand.vmem [shape: f32[1,1,960], index: 1, kind: input, shape index: {}]   ;;  %s2725_s2 = inlined_call_operand.vmem [shape: f32[160,960], index: 2, kind: input, shape index: {}]   ;;  %s2726_s3 = inlined_call_operand.vmem [shape: f32[1,160,196], index: 3, kind: output, shape index: {}]  }
   0x1   :  { %s1479_s14 = smov 0  }
   0x2 LB: > { %s22_s15 = sadd.s32 1, %s1449_s13  ;;  %p1333_p0 = scmp.ge.s32.totalorder %s1453_s14, 1  ;;  %s1453_s14 = sphi %s1479_s14, %s13_s14   ;;  %s1449_s13 = sphi %s1477_s13, %s2729_s13   ;;  %s1445_s12 = sphi %s1475_s12, %s2728_s12  }
   0x3   : > { %p23_p1 = scmp.ge.s32.totalorder %s22_s15, 2  ;;  %p172_p2 = scmp.lt.s32.totalorder %s1453_s14, 3 }
   0x5   : > { %s2731_s15 = smov (%p23_p1, %s22_s15), 0  ;;  %p173_p3 = pnand %p1333_p0, %p172_p2 }
   0x6   : > { %v482_v0 = vld [vmem:[%s2723_s0 + $0x8] sm:$0xff] (!%p173_p3)  ;;  %v484_v1 = vld [vmem:[%s2723_s0 + $0x18] sm:$0xff] (!%p173_p3)  ;;  %v481_v5 = vld [vmem:[%s2723_s0] sm:$0xff] (!%p173_p3)  ;;  %s220_s27 = smul.u32 (!%p173_p3), 10, %s1445_s12  ;;  %vm841_vm0 = vcmask (!%p173_p3), 523264   ;;  %vm1190_vm1 = vcmask (!%p173_p3), 556032  }
   0x7   : > { %176 = sbr.rel (%p173_p3) target bundleno = 387 (0x183), region = 32  ;;  %v610_v2 = vld [vmem:[%s2723_s0 + $0x408] sm:$0xff] (!%p173_p3)  ;;  %v722_v3 = vpack.c.bf16 (!%p173_p3), %v484_v1, %v482_v0  ;;  %v612_v4 = vld [vmem:[%s2723_s0 + $0x418] sm:$0xff] (!%p173_p3)  ;;  %v483_v6 = vld [vmem:[%s2723_s0 + $0x10] sm:$0xff] (!%p173_p3) }
   0x8   : > { %v786_v7 = vpack.c.bf16 (!%p173_p3), %v612_v4, %v610_v2  ;;  %v721_v8 = vpack.c.bf16 (!%p173_p3), %v483_v6, %v481_v5  ;;  %v609_v9 = vld [vmem:[%s2723_s0 + $0x400] sm:$0xff] (!%p173_p3)  ;;  %v611_v10 = vld [vmem:[%s2723_s0 + $0x410] sm:$0xff] (!%p173_p3)  ;;  %v486_v11 = vld [vmem:[%s2723_s0 + $0x28] sm:$0xff] (!%p173_p3)  ;;  %p1711_p4 = scmp.lt.s32.totalorder (!%p173_p3), %s220_s27, 19 }
   0x9   : > { %857 = vmatprep.subr.bf16.mxu1 (!%p173_p3), %v722_v3  ;;  %v785_v12 = vpack.c.bf16 (!%p173_p3), %v611_v10, %v609_v9  ;;  %v488_v13 = vld [vmem:[%s2723_s0 + $0x38] sm:$0xff] (!%p173_p3)  ;;  %v614_v14 = vld [vmem:[%s2723_s0 + $0x428] sm:$0xff] (!%p173_p3)  ;;  %v485_v18 = vld [vmem:[%s2723_s0 + $0x20] sm:$0xff] (!%p173_p3) }
   0xa   : > { %v616_v15 = vld [vmem:[%s2723_s0 + $0x438] sm:$0xff] (!%p173_p3)  ;;  %1023 = vmatprep.subr.bf16.mxu0 (!%p173_p3), %v786_v7  ;;  %858 = vmatpush1.bf16.msra.mxu1 (!%p173_p3), %v721_v8  ;;  %v724_v16 = vpack.c.bf16 (!%p173_p3), %v488_v13, %v486_v11  ;;  %v487_v19 = vld [vmem:[%s2723_s0 + $0x30] sm:$0xff] (!%p173_p3)  ;;  %v613_v20 = vld [vmem:[%s2723_s0 + $0x420] sm:$0xff] (!%p173_p3) }
   0xb   : > { %v788_v17 = vpack.c.bf16 (!%p173_p3), %v616_v15, %v614_v14  ;;  %1024 = vmatpush1.bf16.msra.mxu0 (!%p173_p3), %v785_v12  ;;  %v723_v21 = vpack.c.bf16 (!%p173_p3), %v487_v19, %v485_v18  ;;  %v615_v22 = vld [vmem:[%s2723_s0 + $0x430] sm:$0xff] (!%p173_p3)  ;;  %v490_v23 = vld [vmem:[%s2723_s0 + $0x48] sm:$0xff] (!%p173_p3)  ;;  %v492_v24 = vld [vmem:[%s2723_s0 + $0x58] sm:$0xff] (!%p173_p3) }
   0xc   : > { %859 = vmatprep.subr.bf16.mxu1 (!%p173_p3), %v724_v16  ;;  %v787_v25 = vpack.c.bf16 (!%p173_p3), %v615_v22, %v613_v20  ;;  %v726_v26 = vpack.c.bf16 (!%p173_p3), %v492_v24, %v490_v23  ;;  %v618_v27 = vld [vmem:[%s2723_s0 + $0x448] sm:$0xff] (!%p173_p3)  ;;  %v620_v28 = vld [vmem:[%s2723_s0 + $0x458] sm:$0xff] (!%p173_p3)  ;;  %v489_v29 = vld [vmem:[%s2723_s0 + $0x40] sm:$0xff] (!%p173_p3) }
   0xd   : > { %1025 = vmatprep.subr.bf16.mxu0 (!%p173_p3), %v788_v17  ;;  %v790_v30 = vpack.c.bf16 (!%p173_p3), %v620_v28, %v618_v27  ;;  %v491_v31 = vld [vmem:[%s2723_s0 + $0x50] sm:$0xff] (!%p173_p3)  ;;  %v617_v32 = vld [vmem:[%s2723_s0 + $0x440] sm:$0xff] (!%p173_p3)  ;;  %v494_v35 = vld [vmem:[%s2723_s0 + $0x68] sm:$0xff] (!%p173_p3) }
   0xe   : > { %v619_v33 = vld [vmem:[%s2723_s0 + $0x450] sm:$0xff]  ;;  %860 = vmatpush1.bf16.msra.mxu1 %v723_v21  ;;  %v725_v34 = vpack.c.bf16 %v491_v31, %v489_v29  ;;  %v496_v36 = vld [vmem:[%s2723_s0 + $0x78] sm:$0xff]  ;;  %v622_v37 = vld [vmem:[%s2723_s0 + $0x468] sm:$0xff]  ;;  %s2733_s27 = smov (!%p1711_p4, %s220_s27), 19 }
   0xf   : > { %1026 = vmatpush1.bf16.msra.mxu0 %v787_v25  ;;  %861 = vmatprep.subr.bf16.mxu1 %v726_v26  ;;  %v789_v38 = vpack.c.bf16 %v619_v33, %v617_v32  ;;  %v728_v39 = vpack.c.bf16 %v496_v36, %v494_v35  ;;  %v624_v40 = vld [vmem:[%s2723_s0 + $0x478] sm:$0xff]  ;;  %v493_v41 = vld [vmem:[%s2723_s0 + $0x60] sm:$0xff]  ;;  %v495_v42 = vld [vmem:[%s2723_s0 + $0x70] sm:$0xff]  ;;  %s1345_s5 = sshll.u32 %s2733_s27, 6 }
  0x10   : > { %1027 = vmatprep.subr.bf16.mxu0 %v790_v30  ;;  %v792_v43 = vpack.c.bf16 %v624_v40, %v622_v37  ;;  %v621_v44 = vld [vmem:[%s2723_s0 + $0x460] sm:$0xff]  ;;  %v623_v45 = vld [vmem:[%s2723_s0 + $0x470] sm:$0xff]  ;;  %v498_v46 = vld [vmem:[%s2723_s0 + $0x88] sm:$0xff]  ;;  %v727_v50 = vpack.c.bf16 %v495_v42, %v493_v41  ;;  %s1796_s25 = scalar_lea.vmem %s2725_s2, %s1345_s5 }
  0x11   : > { %v500_v47 = vld [vmem:[%s2723_s0 + $0x98] sm:$0xff]  ;;  %v626_v48 = vld [vmem:[%s2723_s0 + $0x488] sm:$0xff]  ;;  %v791_v51 = vpack.c.bf16 %v623_v45, %v621_v44  ;;  %v497_v53 = vld [vmem:[%s2723_s0 + $0x80] sm:$0xff] }
  0x12   : > { %v628_v49 = vld [vmem:[%s2723_s0 + $0x498] sm:$0xff]  ;;  %862 = vmatpush1.bf16.msra.mxu1 %v725_v34  ;;  %v730_v52 = vpack.c.bf16 %v500_v47, %v498_v46  ;;  %v499_v54 = vld [vmem:[%s2723_s0 + $0x90] sm:$0xff]  ;;  %v625_v55 = vld [vmem:[%s2723_s0 + $0x480] sm:$0xff]  ;;  %v321_v47 = vlaneseq }
  0x13   : > { %1028 = vmatpush1.bf16.msra.mxu0 %v789_v38  ;;  %863 = vmatprep.subr.bf16.mxu1 %v728_v39  ;;  %v794_v56 = vpack.c.bf16 %v628_v49, %v626_v48  ;;  %v627_v57 = vld [vmem:[%s2723_s0 + $0x490] sm:$0xff]  ;;  %v502_v58 = vld [vmem:[%s2723_s0 + $0xa8] sm:$0xff]  ;;  %v504_v59 = vld [vmem:[%s2723_s0 + $0xb8] sm:$0xff]  ;;  %v729_v62 = vpack.c.bf16 %v499_v54, %v497_v53 }
  0x14   : > { %1029 = vmatprep.subr.bf16.mxu0 %v792_v43  ;;  %v630_v60 = vld [vmem:[%s2723_s0 + $0x4a8] sm:$0xff]  ;;  %v632_v61 = vld [vmem:[%s2723_s0 + $0x4b8] sm:$0xff]  ;;  %v793_v63 = vpack.c.bf16 %v627_v57, %v625_v55  ;;  %v732_v0 = vpack.c.bf16 %v504_v59, %v502_v58  ;;  %v501_v1 = vld [vmem:[%s2723_s0 + $0xa0] sm:$0xff] }
  0x15   : > { %v503_v2 = vld [vmem:[%s2723_s0 + $0xb0] sm:$0xff]  ;;  %v629_v3 = vld [vmem:[%s2723_s0 + $0x4a0] sm:$0xff]  ;;  %v796_v4 = vpack.c.bf16 %v632_v61, %v630_v60  ;;  %v506_v6 = vld [vmem:[%s2723_s0 + $0xc8] sm:$0xff]  ;;  %v1760_v60 = vshrl.u32 %v321_v47, 7 }
  0x16   : > { %864 = vmatpush1.bf16.msra.mxu1 %v727_v50  ;;  %v631_v5 = vld [vmem:[%s2723_s0 + $0x4b0] sm:$0xff]  ;;  %v508_v7 = vld [vmem:[%s2723_s0 + $0xd8] sm:$0xff]  ;;  %v634_v8 = vld [vmem:[%s2723_s0 + $0x4c8] sm:$0xff]  ;;  %v731_v10 = vpack.c.bf16 %v503_v2, %v501_v1 }
  0x17   : > { %1030 = vmatpush1.bf16.msra.mxu0 %v791_v51  ;;  %865 = vmatprep.subr.bf16.mxu1 %v730_v52  ;;  %v636_v9 = vld [vmem:[%s2723_s0 + $0x4d8] sm:$0xff]  ;;  %v795_v11 = vpack.c.bf16 %v631_v5, %v629_v3  ;;  %v734_v12 = vpack.c.bf16 %v508_v7, %v506_v6  ;;  %v505_v13 = vld [vmem:[%s2723_s0 + $0xc0] sm:$0xff]  ;;  %v507_v14 = vld [vmem:[%s2723_s0 + $0xd0] sm:$0xff]  ;;  %v331_v47 = vsub.s32 2, %v1760_v60 }
  0x18   : > { %1031 = vmatprep.subr.bf16.mxu0 %v794_v56  ;;  %v633_v15 = vld [vmem:[%s2723_s0 + $0x4c0] sm:$0xff]  ;;  %v798_v16 = vpack.c.bf16 %v636_v9, %v634_v8  ;;  %v635_v17 = vld [vmem:[%s2723_s0 + $0x4d0] sm:$0xff]  ;;  %v510_v18 = vld [vmem:[%s2723_s0 + $0xe8] sm:$0xff]  ;;  %v733_v22 = vpack.c.bf16 %v507_v14, %v505_v13 }
  0x19   : > { %v512_v19 = vld [vmem:[%s2723_s0 + $0xf8] sm:$0xff]  ;;  %v638_v20 = vld [vmem:[%s2723_s0 + $0x4e8] sm:$0xff]  ;;  %v797_v23 = vpack.c.bf16 %v635_v17, %v633_v15  ;;  %v509_v25 = vld [vmem:[%s2723_s0 + $0xe0] sm:$0xff] }
  0x1a   : > { %866 = vmatpush1.bf16.msra.mxu1 %v729_v62  ;;  %v640_v21 = vld [vmem:[%s2723_s0 + $0x4f8] sm:$0xff]  ;;  %v736_v24 = vpack.c.bf16 %v512_v19, %v510_v18  ;;  %v511_v26 = vld [vmem:[%s2723_s0 + $0xf0] sm:$0xff]  ;;  %v637_v27 = vld [vmem:[%s2723_s0 + $0x4e0] sm:$0xff]  ;;  %v347_v18 = vsub.s32 6, %v1760_v60 }
  0x1b   : > { %1032 = vmatpush1.bf16.msra.mxu0 %v793_v63  ;;  %867 = vmatprep.subr.bf16.mxu1 %v732_v0  ;;  %v800_v28 = vpack.c.bf16 %v640_v21, %v638_v20  ;;  %v639_v29 = vld [vmem:[%s2723_s0 + $0x4f0] sm:$0xff]  ;;  %v514_v30 = vld [vmem:[%s2723_s0 + $0x108] sm:$0xff]  ;;  %v516_v31 = vld [vmem:[%s2723_s0 + $0x118] sm:$0xff]  ;;  %v735_v34 = vpack.c.bf16 %v511_v26, %v509_v25 }
  0x1c   : > { %1033 = vmatprep.subr.bf16.mxu0 %v796_v4  ;;  %v642_v32 = vld [vmem:[%s2723_s0 + $0x508] sm:$0xff]  ;;  %v644_v33 = vld [vmem:[%s2723_s0 + $0x518] sm:$0xff]  ;;  %v799_v35 = vpack.c.bf16 %v639_v29, %v637_v27  ;;  %v738_v36 = vpack.c.bf16 %v516_v31, %v514_v30  ;;  %v513_v37 = vld [vmem:[%s2723_s0 + $0x100] sm:$0xff] }
  0x1d   : > { %v515_v38 = vld [vmem:[%s2723_s0 + $0x110] sm:$0xff]  ;;  %v641_v39 = vld [vmem:[%s2723_s0 + $0x500] sm:$0xff]  ;;  %v802_v40 = vpack.c.bf16 %v644_v33, %v642_v32  ;;  %v518_v42 = vld [vmem:[%s2723_s0 + $0x128] sm:$0xff] }
  0x1e   : > { %868 = vmatpush1.bf16.msra.mxu1 %v731_v10  ;;  %v643_v41 = vld [vmem:[%s2723_s0 + $0x510] sm:$0xff]  ;;  %v520_v43 = vld [vmem:[%s2723_s0 + $0x138] sm:$0xff]  ;;  %v646_v44 = vld [vmem:[%s2723_s0 + $0x528] sm:$0xff]  ;;  %v737_v46 = vpack.c.bf16 %v515_v38, %v513_v37 }
  0x1f   : > { %1034 = vmatpush1.bf16.msra.mxu0 %v795_v11  ;;  %869 = vmatprep.subr.bf16.mxu1 %v734_v12  ;;  %v648_v45 = vld [vmem:[%s2723_s0 + $0x538] sm:$0xff]  ;;  %v801_v48 = vpack.c.bf16 %v643_v41, %v641_v39  ;;  %v740_v49 = vpack.c.bf16 %v520_v43, %v518_v42  ;;  %v517_v50 = vld [vmem:[%s2723_s0 + $0x120] sm:$0xff]  ;;  %v519_v51 = vld [vmem:[%s2723_s0 + $0x130] sm:$0xff]  ;;  %v327_v11 = vsub.s32 1, %v1760_v60  ;;  %v343_v12 = vsub.s32 5, %v1760_v60 }
  0x20   : > { %1035 = vmatprep.subr.bf16.mxu0 %v798_v16  ;;  %v645_v52 = vld [vmem:[%s2723_s0 + $0x520] sm:$0xff]  ;;  %v804_v53 = vpack.c.bf16 %v648_v45, %v646_v44  ;;  %v647_v54 = vld [vmem:[%s2723_s0 + $0x530] sm:$0xff]  ;;  %v522_v55 = vld [vmem:[%s2723_s0 + $0x148] sm:$0xff]  ;;  %v739_v59 = vpack.c.bf16 %v519_v51, %v517_v50 }
  0x21   : > { %v524_v56 = vld [vmem:[%s2723_s0 + $0x158] sm:$0xff]  ;;  %v650_v57 = vld [vmem:[%s2723_s0 + $0x548] sm:$0xff]  ;;  %v803_v61 = vpack.c.bf16 %v647_v54, %v645_v52  ;;  %v521_v63 = vld [vmem:[%s2723_s0 + $0x140] sm:$0xff] }
  0x22   : > { %870 = vmatpush1.bf16.msra.mxu1 %v733_v22  ;;  %v652_v58 = vld [vmem:[%s2723_s0 + $0x558] sm:$0xff]  ;;  %v742_v62 = vpack.c.bf16 %v524_v56, %v522_v55  ;;  %v523_v0 = vld [vmem:[%s2723_s0 + $0x150] sm:$0xff]  ;;  %v649_v1 = vld [vmem:[%s2723_s0 + $0x540] sm:$0xff] }
  0x23   : > { %1036 = vmatpush1.bf16.msra.mxu0 %v797_v23  ;;  %871 = vmatprep.subr.bf16.mxu1 %v736_v24  ;;  %v806_v2 = vpack.c.bf16 %v652_v58, %v650_v57  ;;  %v651_v3 = vld [vmem:[%s2723_s0 + $0x550] sm:$0xff]  ;;  %v526_v4 = vld [vmem:[%s2723_s0 + $0x168] sm:$0xff]  ;;  %v528_v5 = vld [vmem:[%s2723_s0 + $0x178] sm:$0xff]  ;;  %v741_v8 = vpack.c.bf16 %v523_v0, %v521_v63  ;;  %v323_v63 = vsub.s32 0, %v1760_v60 }
  0x24   : > { %1037 = vmatprep.subr.bf16.mxu0 %v800_v28  ;;  %v654_v6 = vld [vmem:[%s2723_s0 + $0x568] sm:$0xff]  ;;  %v656_v7 = vld [vmem:[%s2723_s0 + $0x578] sm:$0xff]  ;;  %v525_v9 = vld [vmem:[%s2723_s0 + $0x160] sm:$0xff]  ;;  %v805_v13 = vpack.c.bf16 %v651_v3, %v649_v1  ;;  %v744_v14 = vpack.c.bf16 %v528_v5, %v526_v4  ;;  %v339_v3 = vsub.s32 4, %v1760_v60 }
  0x25   : > { %v527_v10 = vld [vmem:[%s2723_s0 + $0x170] sm:$0xff]  ;;  %v653_v15 = vld [vmem:[%s2723_s0 + $0x560] sm:$0xff]  ;;  %v530_v17 = vld [vmem:[%s2723_s0 + $0x188] sm:$0xff]  ;;  %v808_v19 = vpack.c.bf16 %v656_v7, %v654_v6 }
  0x26   : > { %872 = vmatpush1.bf16.msra.mxu1 %v735_v34  ;;  %v655_v16 = vld [vmem:[%s2723_s0 + $0x570] sm:$0xff]  ;;  %v532_v20 = vld [vmem:[%s2723_s0 + $0x198] sm:$0xff]  ;;  %v658_v21 = vld [vmem:[%s2723_s0 + $0x588] sm:$0xff]  ;;  %v743_v26 = vpack.c.bf16 %v527_v10, %v525_v9 }
  0x27   : > { %1038 = vmatpush1.bf16.msra.mxu0 %v799_v35  ;;  %873 = vmatprep.subr.bf16.mxu1 %v738_v36  ;;  %v660_v22 = vld [vmem:[%s2723_s0 + $0x598] sm:$0xff]  ;;  %v240_v23 = vld [vmem:[%s1796_s25 + $0x8] sm:$0xff]  ;;  %v1824_v25 = vld [vmem:[%s2724_s1] sm:$0xff]  ;;  %v807_v27 = vpack.c.bf16 %v655_v16, %v653_v15  ;;  %v746_v32 = vpack.c.bf16 %v532_v20, %v530_v17 }
  0x28   : > { %1039 = vmatprep.subr.bf16.mxu0 %v802_v40  ;;  %v248_v24 = vld [vmem:[%s1796_s25 + $0x48] sm:$0xff]  ;;  %v1827_v28 = vrot.slane %v1824_v25, %v327_v11  ;;  %v1832_v31 = vrot.slane %v1824_v25, %v343_v12  ;;  %v810_v33 = vpack.c.bf16 %v660_v22, %v658_v21  ;;  %v529_v34 = vld [vmem:[%s2723_s0 + $0x180] sm:$0xff]  ;;  %v531_v35 = vld [vmem:[%s2723_s0 + $0x190] sm:$0xff]  ;;  %v1844_v37 = vrot.slane %v1824_v25, %v347_v18 }
  0x29   : > { %v244_v29 = vld [vmem:[%s1796_s25 + $0x28] sm:$0xff]  ;;  %v657_v36 = vld [vmem:[%s2723_s0 + $0x580] sm:$0xff]  ;;  %v659_v38 = vld [vmem:[%s2723_s0 + $0x590] sm:$0xff]  ;;  %v1892_v0 = vrot.slane %v1824_v25, %v331_v47  ;;  %v1926_v16 = vrot.slane %v1824_v25, %v323_v63  ;;  %v1934_v21 = vrot.slane %v1824_v25, %v339_v3 }
  0x2a   : > { %874 = vmatpush1.bf16.msra.mxu1 %v737_v46  ;;  %v252_v30 = vld [vmem:[%s1796_s25 + $0x68] sm:$0xff]  ;;  %v536_v40 = vld [vmem:[%s2723_s0 + $0x1b8] sm:$0xff]  ;;  %v362_v41 = vmul.f32 %v1827_v28, %v240_v23  ;;  %v370_v42 = vmul.f32 %v1827_v28, %v248_v24  ;;  %v366_v43 = vmul.f32 %v1832_v31, %v244_v29  ;;  %v809_v51 = vpack.c.bf16 %v659_v38, %v657_v36  ;;  %v535_v54 = vld [vmem:[%s2723_s0 + $0x1b0] sm:$0xff] }
  0x2b   : > { %1040 = vmatpush1.bf16.msra.mxu0 %v801_v48  ;;  %875 = vmatprep.subr.bf16.mxu1 %v740_v49  ;;  %v534_v39 = vld [vmem:[%s2723_s0 + $0x1a8] sm:$0xff]  ;;  %v374_v44 = vmul.f32 %v1832_v31, %v252_v30  ;;  %v664_v46 = vld [vmem:[%s2723_s0 + $0x5b8] sm:$0xff]  ;;  %v745_v48 = vpack.c.bf16 %v531_v35, %v529_v34  ;;  %v661_v55 = vld [vmem:[%s2723_s0 + $0x5a0] sm:$0xff] }
  0x2c   : > { %1041 = vmatprep.subr.bf16.mxu0 %v804_v53  ;;  %v662_v45 = vld [vmem:[%s2723_s0 + $0x5a8] sm:$0xff]  ;;  %v442_v49 = vpack.c.bf16 %v370_v42, %v362_v41  ;;  %v748_v52 = vpack.c.bf16 %v536_v40, %v534_v39  ;;  %v533_v53 = vld [vmem:[%s2723_s0 + $0x1a0] sm:$0xff]  ;;  %v663_v57 = vld [vmem:[%s2723_s0 + $0x5b0] sm:$0xff] }
  0x2d   : > { %v446_v50 = vpack.c.bf16 %v374_v44, %v366_v43  ;;  %v812_v56 = vpack.c.bf16 %v664_v46, %v662_v45  ;;  %v538_v58 = vld [vmem:[%s2723_s0 + $0x1c8] sm:$0xff]  ;;  %v747_v1 = vpack.c.bf16 %v535_v54, %v533_v53  ;;  %v811_v4 = vpack.c.bf16 %v663_v57, %v661_v55  ;;  %v539_v6 = vld [vmem:[%s2723_s0 + $0x1d0] sm:$0xff]  ;;  %v665_v7 = vld [vmem:[%s2723_s0 + $0x5c0] sm:$0xff] }
  0x2e   : > { %876 = vmatpush1.bf16.msra.mxu1 %v739_v59  ;;  %v540_v59 = vld [vmem:[%s2723_s0 + $0x1d8] sm:$0xff]  ;;  %889 = vmatprep.mubr.bf16.mxu1 %v442_v49  ;;  %v542_v10 = vld [vmem:[%s2723_s0 + $0x1e8] sm:$0xff]  ;;  %v543_v15 = vld [vmem:[%s2723_s0 + $0x1f0] sm:$0xff] }
  0x2f   : > { %1042 = vmatpush1.bf16.msra.mxu0 %v803_v61  ;;  %877 = vmatprep.subr.bf16.mxu1 %v742_v62  ;;  %v666_v61 = vld [vmem:[%s2723_s0 + $0x5c8] sm:$0xff]  ;;  %v668_v62 = vld [vmem:[%s2723_s0 + $0x5d8] sm:$0xff]  ;;  %v750_v5 = vpack.c.bf16 %v540_v59, %v538_v58  ;;  %v669_v18 = vld [vmem:[%s2723_s0 + $0x5e0] sm:$0xff] }
  0x30   : > { %1043 = vmatprep.subr.bf16.mxu0 %v806_v2  ;;  %1055 = vmatprep.mubr.bf16.mxu0 %v446_v50  ;;  %v537_v2 = vld [vmem:[%s2723_s0 + $0x1c0] sm:$0xff]  ;;  %v814_v9 = vpack.c.bf16 %v668_v62, %v666_v61  ;;  %v544_v11 = vld [vmem:[%s2723_s0 + $0x1f8] sm:$0xff]  ;;  %v670_v12 = vld [vmem:[%s2723_s0 + $0x5e8] sm:$0xff] }
  0x31   : > { %v749_v17 = vpack.c.bf16 %v539_v6, %v537_v2  ;;  %v247_v20 = vld [vmem:[%s1796_s25 + $0x40] sm:$0xff]  ;;  %v752_v23 = vpack.c.bf16 %v544_v11, %v542_v10  ;;  %v671_v24 = vld [vmem:[%s2723_s0 + $0x5f0] sm:$0xff]  ;;  %v546_v30 = vld [vmem:[%s2723_s0 + $0x208] sm:$0xff] }
  0x32   : > { %878 = vmatpush1.bf16.msra.mxu1 %v741_v8  ;;  %v667_v8 = vld [vmem:[%s2723_s0 + $0x5d0] sm:$0xff]  ;;  %v676_v34 = vld [vmem:[%s2723_s0 + $0x618] sm:$0xff]  ;;  %v369_v36 = vmul.f32 %v1926_v16, %v247_v20  ;;  %v260_v38 = vld [vmem:[%s1796_s25 + $0xa8] sm:$0xff]  ;;  %v815_v43 = vpack.c.bf16 %v671_v24, %v669_v18 }
  0x33   : > { %1044 = vmatpush1.bf16.msra.mxu0 %v805_v13  ;;  %879 = vmatprep.subr.bf16.mxu1 %v744_v14  ;;  %v672_v13 = vld [vmem:[%s2723_s0 + $0x5f8] sm:$0xff]  ;;  %v541_v14 = vld [vmem:[%s2723_s0 + $0x1e0] sm:$0xff]  ;;  %v813_v22 = vpack.c.bf16 %v667_v8, %v665_v7  ;;  %v268_v39 = vld [vmem:[%s1796_s25 + $0xe8] sm:$0xff] }
  0x34   : > { %1045 = vmatprep.subr.bf16.mxu0 %v808_v19  ;;  %v239_v19 = vld [vmem:[%s1796_s25] sm:$0xff]  ;;  %v816_v29 = vpack.c.bf16 %v672_v13, %v670_v12  ;;  %v751_v40 = vpack.c.bf16 %v543_v15, %v541_v14  ;;  %v547_v46 = vld [vmem:[%s2723_s0 + $0x210] sm:$0xff]  ;;  %v550_v50 = vld [vmem:[%s2723_s0 + $0x228] sm:$0xff]  ;;  %v390_v53 = vmul.f32 %v1832_v31, %v268_v39 }
  0x35   : > { %v361_v35 = vmul.f32 %v1926_v16, %v239_v19  ;;  %v545_v45 = vld [vmem:[%s2723_s0 + $0x200] sm:$0xff]  ;;  %v675_v49 = vld [vmem:[%s2723_s0 + $0x610] sm:$0xff]  ;;  %v678_v55 = vld [vmem:[%s2723_s0 + $0x628] sm:$0xff] }
  0x36   : > { %880 = vmatpush1.bf16.msra.mxu1 %v743_v26  ;;  %v243_v26 = vld [vmem:[%s1796_s25 + $0x20] sm:$0xff]  ;;  %v753_v58 = vpack.c.bf16 %v547_v46, %v545_v45  ;;  %v551_v61 = vld [vmem:[%s2723_s0 + $0x230] sm:$0xff]  ;;  %v554_v3 = vld [vmem:[%s2723_s0 + $0x248] sm:$0xff] }
  0x37   : > { %1046 = vmatpush1.bf16.msra.mxu0 %v807_v27  ;;  %881 = vmatprep.subr.bf16.mxu1 %v746_v32  ;;  %v251_v27 = vld [vmem:[%s1796_s25 + $0x60] sm:$0xff]  ;;  %v548_v32 = vld [vmem:[%s2723_s0 + $0x218] sm:$0xff]  ;;  %v365_v41 = vmul.f32 %v1934_v21, %v243_v26  ;;  %v441_v54 = vpack.c.bf16 %v369_v36, %v361_v35  ;;  %v679_v63 = vld [vmem:[%s2723_s0 + $0x630] sm:$0xff] }
  0x38   : > { %1047 = vmatprep.subr.bf16.mxu0 %v810_v33  ;;  %v674_v33 = vld [vmem:[%s2723_s0 + $0x608] sm:$0xff]  ;;  %v373_v42 = vmul.f32 %v1934_v21, %v251_v27  ;;  %v754_v44 = vpack.c.bf16 %v548_v32, %v546_v30  ;;  %v673_v47 = vld [vmem:[%s2723_s0 + $0x600] sm:$0xff]  ;;  %v556_v7 = vld [vmem:[%s2723_s0 + $0x258] sm:$0xff] }
  0x39   : > { %v549_v57 = vld [vmem:[%s2723_s0 + $0x220] sm:$0xff]  ;;  %v682_v8 = vld [vmem:[%s2723_s0 + $0x648] sm:$0xff]  ;;  %v555_v15 = vld [vmem:[%s2723_s0 + $0x250] sm:$0xff] }
  0x3a   : > { %882 = vmatpush1.bf16.msra.mxu1 %v745_v48  ;;  %v818_v48 = vpack.c.bf16 %v676_v34, %v674_v33  ;;  %v445_v59 = vpack.c.bf16 %v373_v42, %v365_v41  ;;  %v677_v62 = vld [vmem:[%s2723_s0 + $0x620] sm:$0xff]  ;;  %v276_v12 = vld [vmem:[%s1796_s25 + $0x128] sm:$0xff]  ;;  %v755_v14 = vpack.c.bf16 %v551_v61, %v549_v57  ;;  %v683_v18 = vld [vmem:[%s2723_s0 + $0x650] sm:$0xff] }
  0x3b   : > { %1048 = vmatpush1.bf16.msra.mxu0 %v809_v51  ;;  %883 = vmatprep.subr.bf16.mxu1 %v748_v52  ;;  %v552_v51 = vld [vmem:[%s2723_s0 + $0x238] sm:$0xff]  ;;  %v382_v52 = vmul.f32 %v1832_v31, %v260_v38  ;;  %v553_v11 = vld [vmem:[%s2723_s0 + $0x240] sm:$0xff]  ;;  %v284_v13 = vld [vmem:[%s1796_s25 + $0x168] sm:$0xff]  ;;  %v398_v33 = vmul.f32 %v1832_v31, %v276_v12 }
  0x3c   : > { %1049 = vmatprep.subr.bf16.mxu0 %v812_v56  ;;  %v680_v56 = vld [vmem:[%s2723_s0 + $0x638] sm:$0xff]  ;;  %v756_v2 = vpack.c.bf16 %v552_v51, %v550_v50  ;;  %v558_v26 = vld [vmem:[%s2723_s0 + $0x268] sm:$0xff]  ;;  %v406_v34 = vmul.f32 %v1832_v31, %v284_v13  ;;  %v557_v38 = vld [vmem:[%s2723_s0 + $0x260] sm:$0xff]  ;;  %v757_v42 = vpack.c.bf16 %v555_v15, %v553_v11 }
  0x3d   : > { %v820_v6 = vpack.c.bf16 %v680_v56, %v678_v55  ;;  %v454_v10 = vpack.c.bf16 %v390_v53, %v382_v52  ;;  %v560_v27 = vld [vmem:[%s2723_s0 + $0x278] sm:$0xff]  ;;  %v686_v30 = vld [vmem:[%s2723_s0 + $0x668] sm:$0xff]  ;;  %v263_v41 = vld [vmem:[%s1796_s25 + $0xc0] sm:$0xff] }
  0x3e   : > { %884 = vmatpush1.bf16.msra.mxu1 %v747_v1  ;;  %v817_v1 = vpack.c.bf16 %v675_v49, %v673_v47  ;;  %v688_v32 = vld [vmem:[%s2723_s0 + $0x678] sm:$0xff]  ;;  %v264_v35 = vld [vmem:[%s1796_s25 + $0xc8] sm:$0xff]  ;;  %v687_v45 = vld [vmem:[%s2723_s0 + $0x670] sm:$0xff]  ;;  %v760_v50 = vpack.c.bf16 %v560_v27, %v558_v26 }
  0x3f   : > { %1050 = vmatpush1.bf16.msra.mxu0 %v811_v4  ;;  %885 = vmatprep.subr.bf16.mxu1 %v750_v5  ;;  %v259_v4 = vld [vmem:[%s1796_s25 + $0xa0] sm:$0xff]  ;;  %v386_v39 = vmul.f32 %v1827_v28, %v264_v35  ;;  %v562_v51 = vld [vmem:[%s2723_s0 + $0x288] sm:$0xff]  ;;  %v824_v55 = vpack.c.bf16 %v688_v32, %v686_v30  ;;  %v564_v56 = vld [vmem:[%s2723_s0 + $0x298] sm:$0xff] }
  0x40   : > { %1051 = vmatprep.subr.bf16.mxu0 %v814_v9  ;;  %v267_v5 = vld [vmem:[%s1796_s25 + $0xe0] sm:$0xff]  ;;  %v684_v9 = vld [vmem:[%s2723_s0 + $0x658] sm:$0xff]  ;;  %v381_v19 = vmul.f32 %v1934_v21, %v259_v4  ;;  %v690_v57 = vld [vmem:[%s2723_s0 + $0x688] sm:$0xff] }
  0x41   : > { %v389_v20 = vmul.f32 %v1934_v21, %v267_v5  ;;  %v822_v24 = vpack.c.bf16 %v684_v9, %v682_v8  ;;  %v275_v52 = vld [vmem:[%s1796_s25 + $0x120] sm:$0xff]  ;;  %v2093_v5 = vld [vmem:[%s2723_s0 + $0x690] sm:$0xff]  ;;  %v762_v9 = vpack.c.bf16 %v564_v56, %v562_v51  ;;  %v566_v11 = vld [vmem:[%s2723_s0 + $0x2a8] sm:$0xff] }
  0x42   : > { %886 = vmatpush1.bf16.msra.mxu1 %v749_v17  ;;  %v681_v17 = vld [vmem:[%s2723_s0 + $0x640] sm:$0xff]  ;;  %v568_v12 = vld [vmem:[%s2723_s0 + $0x2b8] sm:$0xff]  ;;  %v272_v13 = vld [vmem:[%s1796_s25 + $0x108] sm:$0xff] }
  0x43   : > { %1052 = vmatpush1.bf16.msra.mxu0 %v813_v22  ;;  %887 = vmatprep.subr.bf16.mxu1 %v752_v23  ;;  %v819_v22 = vpack.c.bf16 %v679_v63, %v677_v62  ;;  %v758_v23 = vpack.c.bf16 %v556_v7, %v554_v3  ;;  %v453_v46 = vpack.c.bf16 %v389_v20, %v381_v19  ;;  %v283_v53 = vld [vmem:[%s1796_s25 + $0x160] sm:$0xff]  ;;  %v292_v62 = vld [vmem:[%s1796_s25 + $0x1a8] sm:$0xff]  ;;  %v563_v3 = vld [vmem:[%s2723_s0 + $0x290] sm:$0xff] }
  0x44   : > { %1053 = vmatprep.subr.bf16.mxu0 %v816_v29  ;;  %v256_v29 = vld [vmem:[%s1796_s25 + $0x88] sm:$0xff]  ;;  %v821_v49 = vpack.c.bf16 %v683_v18, %v681_v17  ;;  %v2078_v61 = vld [vmem:[%s2723_s0 + $0x280] sm:$0xff]  ;;  %v405_v7 = vmul.f32 %v1934_v21, %v283_v53  ;;  %v696_v15 = vld [vmem:[%s2723_s0 + $0x6b8] sm:$0xff]  ;;  %v414_v17 = vmul.f32 %v1832_v31, %v292_v62  ;;  %v394_v20 = vmul.f32 %v1827_v28, %v272_v13 }
  0x45   : > { %v378_v36 = vmul.f32 %v1827_v28, %v256_v29  ;;  %v300_v63 = vld [vmem:[%s1796_s25 + $0x1e8] sm:$0xff]  ;;  %v2088_v4 = vld [vmem:[%s2723_s0 + $0x680] sm:$0xff]  ;;  %v761_v27 = vpack.c.bf16 %v563_v3, %v2078_v61  ;;  %v567_v29 = vld [vmem:[%s2723_s0 + $0x2b0] sm:$0xff]  ;;  %v351_v53 = vsub.s32 7, %v1760_v60 }
  0x46   : > { %888 = vmatpush1.bf16.msra.mxu1 %v751_v40  ;;  %v255_v40 = vld [vmem:[%s1796_s25 + $0x80] sm:$0xff]  ;;  %v422_v18 = vmul.f32 %v1832_v31, %v300_v63  ;;  %v280_v19 = vld [vmem:[%s1796_s25 + $0x148] sm:$0xff]  ;;  %v2134_v32 = vld [vmem:[%s2723_s0 + $0x6b0] sm:$0xff] }
  0x47   : > { %1054 = vmatpush1.bf16.msra.mxu0 %v815_v43  ;;  %940 = vmatprep.subr.bf16.mxu1 %v754_v44  ;;  %v559_v43 = vld [vmem:[%s2723_s0 + $0x270] sm:$0xff]  ;;  %v685_v44 = vld [vmem:[%s2723_s0 + $0x660] sm:$0xff]  ;;  %v377_v47 = vmul.f32 %v1926_v16, %v255_v40  ;;  %v316_v51 = vld [vmem:[%s1796_s25 + $0x268] sm:$0xff]  ;;  %v2225_v13 = vrot.slane %v1824_v25, %v351_v53 }
  0x48   : > { %1106 = vmatprep.subr.bf16.mxu0 %v818_v48  ;;  %v385_v48 = vmul.f32 %v1926_v16, %v263_v41  ;;  %v823_v8 = vpack.c.bf16 %v687_v45, %v685_v44  ;;  %v279_v26 = vld [vmem:[%s1796_s25 + $0x140] sm:$0xff]  ;;  %v572_v44 = vld [vmem:[%s2723_s0 + $0x2d8] sm:$0xff]  ;;  %v698_v45 = vld [vmem:[%s2723_s0 + $0x6c8] sm:$0xff] }
  0x49   : > { %890 = vmatmul.mubr.bf16.vlgmr.msra.gmra.mrb[0].mxu1 %v441_v54  ;;  %v450_v54 = vpack.c.bf16 %v386_v39, %v378_v36  ;;  %v2129_v30 = vld [vmem:[%s2723_s0 + $0x6a0] sm:$0xff]  ;;  %v401_v35 = vmul.f32 %v1926_v16, %v279_v26  ;;  %v825_v36 = vpack.c.bf16 %v2093_v5, %v2088_v4  ;;  %v570_v39 = vld [vmem:[%s2723_s0 + $0x2c8] sm:$0xff]  ;;  %v2201_v3 = vld [vmem:[%s2723_s0 + $0x6f8] sm:$0xff] }
  0x4a   : > { %941 = vmatpush1.bf16.msra.mxu1 %v753_v58  ;;  %1056 = vmatmul.mubr.bf16.vlgmr.msra.gmra.mrb[0].mxu0 %v445_v59  ;;  %v692_v58 = vld [vmem:[%s2723_s0 + $0x698] sm:$0xff]  ;;  %v462_v59 = vpack.c.bf16 %v406_v34, %v398_v33  ;;  %v291_v40 = vld [vmem:[%s1796_s25 + $0x1a0] sm:$0xff]  ;;  %v827_v62 = vpack.c.bf16 %v2134_v32, %v2129_v30  ;;  %v766_v63 = vpack.c.bf16 %v572_v44, %v570_v39  ;;  %v288_v4 = vld [vmem:[%s1796_s25 + $0x188] sm:$0xff] }
  0x4b   : > { %1107 = vmatpush1.bf16.msra.mxu0 %v817_v1  ;;  %942 = vmatprep.subr.bf16.mxu1 %v756_v2  ;;  %v449_v1 = vpack.c.bf16 %v385_v48, %v377_v47  ;;  %v759_v2 = vpack.c.bf16 %v559_v43, %v557_v38  ;;  %v764_v38 = vpack.c.bf16 %v568_v12, %v566_v11  ;;  %v299_v41 = vld [vmem:[%s1796_s25 + $0x1e0] sm:$0xff]  ;;  %v253_v26 = vld [vmem:[%s1796_s25 + $0x70] sm:$0xff]  ;;  %v2256_v30 = vld [vmem:[%s2723_s0 + $0x308] sm:$0xff] }
  0x4c   : > { %1108 = vmatprep.subr.bf16.mxu0 %v820_v6  ;;  %1065 = vmatprep.mubr.bf16.mxu0 %v454_v10  ;;  %v397_v6 = vmul.f32 %v1934_v21, %v275_v52  ;;  %v826_v10 = vpack.c.bf16 %v692_v58, %v690_v57  ;;  %v470_v47 = vpack.c.bf16 %v422_v18, %v414_v17  ;;  %v2157_v48 = vld [vmem:[%s2723_s0 + $0x2c0] sm:$0xff]  ;;  %v2177_v57 = vld [vmem:[%s2723_s0 + $0x6d0] sm:$0xff]  ;;  %v2182_v58 = vld [vmem:[%s2723_s0 + $0x2e8] sm:$0xff] }
  0x4d   : > { %899 = vmatprep.mubr.bf16.mxu1 %v450_v54  ;;  %v335_v54 = vsub.s32 3, %v1760_v60  ;;  %v2172_v56 = vld [vmem:[%s2723_s0 + $0x6c0] sm:$0xff]  ;;  %v2187_v60 = vld [vmem:[%s2723_s0 + $0x2f8] sm:$0xff]  ;;  %v421_v61 = vmul.f32 %v1934_v21, %v299_v41  ;;  %v2282_v41 = vmul.f32 %v1844_v37, %v253_v26  ;;  %v2294_v44 = vld [vmem:[%s2723_s0 + $0x310] sm:$0xff] }
  0x4e   : > { %943 = vmatpush1.bf16.msra.mxu1 %v755_v14  ;;  %v694_v14 = vld [vmem:[%s2723_s0 + $0x6a8] sm:$0xff]  ;;  %v461_v33 = vpack.c.bf16 %v405_v7, %v397_v6  ;;  %v2207_v5 = vld [vmem:[%s2723_s0 + $0x2e0] sm:$0xff]  ;;  %v2212_v6 = vld [vmem:[%s2723_s0 + $0x2f0] sm:$0xff] }
  0x4f   : > { %1109 = vmatpush1.bf16.msra.mxu0 %v819_v22  ;;  %944 = vmatprep.subr.bf16.mxu1 %v758_v23  ;;  %v2117_v22 = vld [vmem:[%s2723_s0 + $0x2a0] sm:$0xff]  ;;  %v402_v23 = vmul.f32 %v1827_v28, %v280_v19  ;;  %v828_v43 = vpack.c.bf16 %v696_v15, %v694_v14  ;;  %v2230_v17 = vrot.slane %v1824_v25, %v335_v54  ;;  %v2261_v32 = vld [vmem:[%s2723_s0 + $0x318] sm:$0xff] }
  0x50   : > { %1110 = vmatprep.subr.bf16.mxu0 %v822_v24  ;;  %v271_v24 = vld [vmem:[%s1796_s25 + $0x100] sm:$0xff]  ;;  %v829_v25 = vpack.c.bf16 %v2177_v57, %v2172_v56  ;;  %v246_v39 = vld [vmem:[%s1796_s25 + $0x38] sm:$0xff] }
  0x51   : > { %900 = vmatmul.mubr.bf16.gmra.mrb[4].mxu1 %v449_v1  ;;  %v393_v34 = vmul.f32 %v1926_v16, %v271_v24  ;;  %v307_v11 = vld [vmem:[%s1796_s25 + $0x220] sm:$0xff]  ;;  %v245_v24 = vld [vmem:[%s1796_s25 + $0x30] sm:$0xff] }
  0x52   : > { %945 = vmatpush1.bf16.msra.mxu1 %v757_v42  ;;  %1066 = vmatmul.mubr.bf16.gmra.mrb[4].mxu0 %v453_v46  ;;  %v458_v42 = vpack.c.bf16 %v402_v23, %v394_v20  ;;  %v700_v46 = vld [vmem:[%s2723_s0 + $0x6d8] sm:$0xff]  ;;  %v287_v14 = vld [vmem:[%s1796_s25 + $0x180] sm:$0xff] }
  0x53   : > { %1111 = vmatpush1.bf16.msra.mxu0 %v821_v49  ;;  %946 = vmatprep.subr.bf16.mxu1 %v760_v50  ;;  %v2162_v49 = vld [vmem:[%s2723_s0 + $0x2d0] sm:$0xff]  ;;  %v308_v50 = vld [vmem:[%s1796_s25 + $0x228] sm:$0xff]  ;;  %v457_v52 = vpack.c.bf16 %v401_v35, %v393_v34  ;;  %v830_v1 = vpack.c.bf16 %v700_v46, %v698_v45  ;;  %v295_v15 = vld [vmem:[%s1796_s25 + $0x1c0] sm:$0xff]  ;;  %v2302_v46 = vmul.f32 %v1934_v21, %v307_v11 }
  0x54   : > { %1112 = vmatprep.subr.bf16.mxu0 %v824_v55  ;;  %1075 = vmatprep.mubr.bf16.mxu0 %v462_v59  ;;  %v763_v55 = vpack.c.bf16 %v567_v29, %v2117_v22  ;;  %v413_v59 = vmul.f32 %v1934_v21, %v291_v40  ;;  %v2215_v7 = vmul.f32 %v1832_v31, %v308_v50  ;;  %v2237_v18 = vld [vmem:[%s2723_s0 + $0x6e0] sm:$0xff]  ;;  %v2251_v29 = vld [vmem:[%s2723_s0 + $0x6f0] sm:$0xff]  ;;  %v2268_v35 = vld [vmem:[%s2723_s0 + $0x708] sm:$0xff] }
  0x55   : > { %909 = vmatprep.mubr.bf16.mxu1 %v458_v42  ;;  %v315_v20 = vld [vmem:[%s1796_s25 + $0x260] sm:$0xff]  ;;  %v409_v22 = vmul.f32 %v1926_v16, %v287_v14  ;;  %v417_v23 = vmul.f32 %v1926_v16, %v295_v15  ;;  %v2279_v40 = vmul.f32 %v1844_v37, %v245_v24  ;;  %v767_v42 = vpack.c.bf16 %v2212_v6, %v2207_v5  ;;  %v304_v50 = vld [vmem:[%s1796_s25 + $0x208] sm:$0xff]  ;;  %v2363_v6 = vld [vmem:[%s2723_s0 + $0x330] sm:$0xff] }
  0x56   : > { %947 = vmatpush1.bf16.msra.mxu1 %v759_v2  ;;  %v2196_v2 = vld [vmem:[%s2723_s0 + $0x6e8] sm:$0xff]  ;;  %v469_v19 = vpack.c.bf16 %v421_v61, %v413_v59  ;;  %v2299_v45 = vld [vmem:[%s2723_s0 + $0x700] sm:$0xff]  ;;  %v426_v54 = vmul.f32 %v1827_v28, %v304_v50  ;;  %v831_v57 = vpack.c.bf16 %v2251_v29, %v2237_v18  ;;  %v261_v61 = vld [vmem:[%s1796_s25 + $0xb0] sm:$0xff] }
  0x57   : > { %1113 = vmatpush1.bf16.msra.mxu0 %v823_v8  ;;  %948 = vmatprep.subr.bf16.mxu1 %v762_v9  ;;  %v2218_v8 = vmul.f32 %v1832_v31, %v316_v51  ;;  %v296_v9 = vld [vmem:[%s1796_s25 + $0x1c8] sm:$0xff]  ;;  %v765_v31 = vpack.c.bf16 %v2162_v49, %v2157_v48  ;;  %v832_v34 = vpack.c.bf16 %v2201_v3, %v2196_v2  ;;  %v254_v48 = vld [vmem:[%s1796_s25 + $0x78] sm:$0xff]  ;;  %v311_v56 = vld [vmem:[%s1796_s25 + $0x240] sm:$0xff] }
  0x58   : > { %1114 = vmatprep.subr.bf16.mxu0 %v826_v10  ;;  %v410_v10 = vmul.f32 %v1827_v28, %v288_v4  ;;  %v418_v12 = vmul.f32 %v1827_v28, %v296_v9  ;;  %v465_v49 = vpack.c.bf16 %v417_v23, %v409_v22  ;;  %v312_v51 = vld [vmem:[%s1796_s25 + $0x248] sm:$0xff]  ;;  %v447_v53 = vpack.c.bf16 %v2282_v41, %v2279_v40  ;;  %v269_v4 = vld [vmem:[%s1796_s25 + $0xf0] sm:$0xff]  ;;  %v2358_v5 = vld [vmem:[%s2723_s0 + $0x320] sm:$0xff] }
  0x59   : > { %910 = vmatmul.mubr.bf16.gmra.mrb[8].mxu1 %v457_v52  ;;  %v2313_v52 = vld [vmem:[%s2723_s0 + $0x710] sm:$0xff]  ;;  %v2330_v59 = vld [vmem:[%s2723_s0 + $0x328] sm:$0xff]  ;;  %v2352_v2 = vmul.f32 %v2225_v13, %v254_v48  ;;  %v2382_v11 = vmul.f32 %v1844_v37, %v261_v61  ;;  %v2415_v24 = vld [vmem:[%s2723_s0 + $0x758] sm:$0xff]  ;;  %v771_v48 = vpack.c.bf16 %v2363_v6, %v2358_v5 }
  0x5a   : > { %949 = vmatpush1.bf16.msra.mxu1 %v761_v27  ;;  %1076 = vmatmul.mubr.bf16.gmra.mrb[8].mxu0 %v461_v33  ;;  %v768_v27 = vpack.c.bf16 %v2187_v60, %v2182_v58  ;;  %v466_v33 = vpack.c.bf16 %v418_v12, %v410_v10  ;;  %v770_v58 = vpack.c.bf16 %v2261_v32, %v2256_v30  ;;  %v2410_v23 = vld [vmem:[%s2723_s0 + $0x748] sm:$0xff] }
  0x5b   : > { %1115 = vmatpush1.bf16.msra.mxu0 %v825_v36  ;;  %950 = vmatprep.subr.bf16.mxu1 %v764_v38  ;;  %v2273_v36 = vld [vmem:[%s2723_s0 + $0x718] sm:$0xff]  ;;  %v478_v38 = vpack.c.bf16 %v2218_v8, %v2215_v7  ;;  %v2368_v7 = vld [vmem:[%s2723_s0 + $0x720] sm:$0xff]  ;;  %v2373_v8 = vld [vmem:[%s2723_s0 + $0x730] sm:$0xff]  ;;  %v2379_v10 = vmul.f32 %v1926_v16, %v311_v56  ;;  %v2385_v12 = vmul.f32 %v1844_v37, %v269_v4 }
  0x5c   : > { %1116 = vmatprep.subr.bf16.mxu0 %v828_v43  ;;  %1085 = vmatprep.mubr.bf16.mxu0 %v470_v47  ;;  %v2289_v43 = vld [vmem:[%s2723_s0 + $0x300] sm:$0xff]  ;;  %v2305_v47 = vmul.f32 %v1934_v21, %v315_v20  ;;  %v434_v21 = vmul.f32 %v1827_v28, %v312_v51  ;;  %v834_v60 = vpack.c.bf16 %v2273_v36, %v2268_v35  ;;  %v2335_v28 = vld [vmem:[%s2723_s0 + $0x338] sm:$0xff]  ;;  %v277_v35 = vld [vmem:[%s1796_s25 + $0x130] sm:$0xff] }
  0x5d   : > { %919 = vmatprep.mubr.bf16.mxu1 %v466_v33  ;;  %v769_v14 = vpack.c.bf16 %v2294_v44, %v2289_v43  ;;  %v833_v15 = vpack.c.bf16 %v2313_v52, %v2299_v45  ;;  %v250_v20 = vld [vmem:[%s1796_s25 + $0x58] sm:$0xff]  ;;  %v772_v22 = vpack.c.bf16 %v2335_v28, %v2330_v59  ;;  %v455_v26 = vpack.c.bf16 %v2385_v12, %v2382_v11  ;;  %v249_v33 = vld [vmem:[%s1796_s25 + $0x50] sm:$0xff]  ;;  %v590_v50 = vld [vmem:[%s2723_s0 + $0x368] sm:$0xff] }
  0x5e   : > { %951 = vmatpush1.bf16.msra.mxu1 %v763_v55  ;;  %v303_v55 = vld [vmem:[%s1796_s25 + $0x200] sm:$0xff]  ;;  %v474_v3 = vpack.c.bf16 %v434_v21, %v426_v54  ;;  %v477_v18 = vpack.c.bf16 %v2305_v47, %v2302_v46  ;;  %v372_v32 = vmul.f32 %v2230_v17, %v250_v20  ;;  %v285_v36 = vld [vmem:[%s1796_s25 + $0x170] sm:$0xff]  ;;  %v2455_v45 = vmul.f32 %v1892_v0, %v249_v33  ;;  %v592_v51 = vld [vmem:[%s2723_s0 + $0x378] sm:$0xff] }
  0x5f   : > { %1117 = vmatpush1.bf16.msra.mxu0 %v827_v62  ;;  %952 = vmatprep.subr.bf16.mxu1 %v766_v63  ;;  %v2341_v62 = vld [vmem:[%s2723_s0 + $0x728] sm:$0xff]  ;;  %v2346_v63 = vld [vmem:[%s2723_s0 + $0x738] sm:$0xff]  ;;  %v2376_v9 = vmul.f32 %v1926_v16, %v303_v55  ;;  %v2450_v43 = vld [vmem:[%s2723_s0 + $0x750] sm:$0xff]  ;;  %v2458_v46 = vmul.f32 %v1844_v37, %v277_v35  ;;  %v2461_v47 = vmul.f32 %v1844_v37, %v285_v36 }
  0x60   : > { %1118 = vmatprep.subr.bf16.mxu0 %v830_v1  ;;  %v2349_v1 = vmul.f32 %v2225_v13, %v246_v39  ;;  %v2399_v16 = vld [vmem:[%s2723_s0 + $0x358] sm:$0xff]  ;;  %v836_v29 = vpack.c.bf16 %v2346_v63, %v2341_v62  ;;  %v2440_v39 = vld [vmem:[%s2723_s0 + $0x350] sm:$0xff]  ;;  %v718_v56 = vld [vmem:[%s2723_s0 + $0x768] sm:$0xff]  ;;  %v838_v61 = vpack.c.bf16 %v2415_v24, %v2410_v23 }
  0x61   : > { %920 = vmatmul.mubr.bf16.gmra.mrb[12].mxu1 %v465_v49  ;;  %v473_v44 = vpack.c.bf16 %v2379_v10, %v2376_v9  ;;  %v835_v49 = vpack.c.bf16 %v2373_v8, %v2368_v7  ;;  %v257_v54 = vld [vmem:[%s1796_s25 + $0x90] sm:$0xff]  ;;  %v589_v62 = vld [vmem:[%s2723_s0 + $0x360] sm:$0xff]  ;;  %v274_v11 = vld [vmem:[%s1796_s25 + $0x118] sm:$0xff] }
  0x62   : > { %953 = vmatpush1.bf16.msra.mxu1 %v765_v31  ;;  %1086 = vmatmul.mubr.bf16.gmra.mrb[12].mxu0 %v469_v19  ;;  %v2394_v31 = vld [vmem:[%s2723_s0 + $0x348] sm:$0xff]  ;;  %v242_v19 = vld [vmem:[%s1796_s25 + $0x18] sm:$0xff]  ;;  %v448_v30 = vpack.c.bf16 %v2352_v2, %v2349_v1  ;;  %v265_v21 = vld [vmem:[%s1796_s25 + $0xd0] sm:$0xff]  ;;  %v2502_v2 = vmul.f32 %v1892_v0, %v257_v54 }
  0x63   : > { %1119 = vmatpush1.bf16.msra.mxu0 %v829_v25  ;;  %954 = vmatprep.subr.bf16.mxu1 %v768_v27  ;;  %v364_v25 = vmul.f32 %v2230_v17, %v242_v19  ;;  %v241_v27 = vld [vmem:[%s1796_s25 + $0x10] sm:$0xff]  ;;  %v774_v55 = vpack.c.bf16 %v2399_v16, %v2394_v31  ;;  %v717_v1 = vld [vmem:[%s2723_s0 + $0x760] sm:$0xff]  ;;  %v2508_v4 = vmul.f32 %v1892_v0, %v265_v21  ;;  %v598_v54 = vld [vmem:[%s2723_s0 + $0x3a8] sm:$0xff] }
  0x64   : > { %1120 = vmatprep.subr.bf16.mxu0 %v832_v34  ;;  %1095 = vmatprep.mubr.bf16.mxu0 %v478_v38  ;;  %v2428_v34 = vmul.f32 %v1892_v0, %v241_v27  ;;  %v2435_v38 = vld [vmem:[%s2723_s0 + $0x340] sm:$0xff]  ;;  %v293_v59 = vld [vmem:[%s1796_s25 + $0x1b0] sm:$0xff]  ;;  %v776_v16 = vpack.c.bf16 %v592_v51, %v590_v50  ;;  %v270_v27 = vld [vmem:[%s1796_s25 + $0xf8] sm:$0xff] }
  0x65   : > { %929 = vmatprep.mubr.bf16.mxu1 %v474_v3  ;;  %v444_v52 = vpack.c.bf16 %v372_v32, %v364_v25  ;;  %v301_v28 = vld [vmem:[%s1796_s25 + $0x1f0] sm:$0xff]  ;;  %v2511_v5 = vmul.f32 %v1844_v37, %v293_v59  ;;  %v773_v9 = vpack.c.bf16 %v2440_v39, %v2435_v38  ;;  %v451_v19 = vpack.c.bf16 %v2508_v4, %v2502_v2  ;;  %v262_v25 = vld [vmem:[%s1796_s25 + $0xb8] sm:$0xff] }
  0x66   : > { %955 = vmatpush1.bf16.msra.mxu1 %v767_v42  ;;  %v2445_v42 = vld [vmem:[%s2723_s0 + $0x740] sm:$0xff]  ;;  %v591_v63 = vld [vmem:[%s2723_s0 + $0x370] sm:$0xff]  ;;  %v2514_v6 = vmul.f32 %v1844_v37, %v301_v28  ;;  %v384_v50 = vmul.f32 %v2225_v13, %v262_v25  ;;  %v392_v51 = vmul.f32 %v2225_v13, %v270_v27  ;;  %v600_v21 = vld [vmem:[%s2723_s0 + $0x3b8] sm:$0xff] }
  0x67   : > { %1121 = vmatpush1.bf16.msra.mxu0 %v831_v57  ;;  %956 = vmatprep.subr.bf16.mxu1 %v770_v58  ;;  %v720_v57 = vld [vmem:[%s2723_s0 + $0x778] sm:$0xff]  ;;  %v443_v58 = vpack.c.bf16 %v2455_v45, %v2428_v34  ;;  %v719_v3 = vld [vmem:[%s2723_s0 + $0x770] sm:$0xff]  ;;  %v837_v10 = vpack.c.bf16 %v2450_v43, %v2445_v42  ;;  %v775_v32 = vpack.c.bf16 %v591_v63, %v589_v62  ;;  %v597_v62 = vld [vmem:[%s2723_s0 + $0x3a0] sm:$0xff] }
  0x68   : > { %1122 = vmatprep.subr.bf16.mxu0 %v834_v60  ;;  %v463_v60 = vpack.c.bf16 %v2461_v47, %v2458_v46  ;;  %v273_v7 = vld [vmem:[%s1796_s25 + $0x110] sm:$0xff]  ;;  %v471_v20 = vpack.c.bf16 %v2514_v6, %v2511_v5  ;;  %v840_v24 = vpack.c.bf16 %v720_v57, %v718_v56  ;;  %v839_v33 = vpack.c.bf16 %v719_v3, %v717_v1  ;;  %v604_v3 = vld [vmem:[%s2723_s0 + $0x3d8] sm:$0xff] }
  0x69   : > { %930 = vmatmul.mubr.bf16.gmra.mrb[16].mxu1 %v473_v44  ;;  %v281_v8 = vld [vmem:[%s1796_s25 + $0x150] sm:$0xff]  ;;  %v456_v1 = vpack.c.bf16 %v392_v51, %v384_v50  ;;  %v258_v25 = vld [vmem:[%s1796_s25 + $0x98] sm:$0xff] }
  0x6a   : > { %957 = vmatpush1.bf16.msra.mxu1 %v769_v14  ;;  %1096 = vmatmul.mubr.bf16.gmra.mrb[16].mxu0 %v477_v18  ;;  %v594_v14 = vld [vmem:[%s2723_s0 + $0x388] sm:$0xff]  ;;  %v317_v31 = vld [vmem:[%s1796_s25 + $0x270] sm:$0xff]  ;;  %v596_v18 = vld [vmem:[%s2723_s0 + $0x398] sm:$0xff] }
  0x6b   : > { %1123 = vmatpush1.bf16.msra.mxu0 %v833_v15  ;;  %958 = vmatprep.subr.bf16.mxu1 %v772_v22  ;;  %v309_v15 = vld [vmem:[%s1796_s25 + $0x230] sm:$0xff]  ;;  %v2548_v36 = vmul.f32 %v1844_v37, %v317_v31  ;;  %v778_v42 = vpack.c.bf16 %v596_v18, %v594_v14  ;;  %v601_v14 = vld [vmem:[%s2723_s0 + $0x3c0] sm:$0xff]  ;;  %v608_v31 = vld [vmem:[%s2723_s0 + $0x3f8] sm:$0xff] }
  0x6c   : > { %1124 = vmatprep.subr.bf16.mxu0 %v836_v29  ;;  %1338 = vmatprep.mubr.msk.bf16.mxu0 %vm841_vm0, %v448_v30  ;;  %v289_v22 = vld [vmem:[%s1796_s25 + $0x190] sm:$0xff]  ;;  %v2539_v29 = vmul.f32 %v1892_v0, %v273_v7  ;;  %v2542_v30 = vmul.f32 %v1892_v0, %v281_v8  ;;  %v2545_v35 = vmul.f32 %v1844_v37, %v309_v15  ;;  %v593_v37 = vld [vmem:[%s2723_s0 + $0x380] sm:$0xff]  ;;  %v278_v7 = vld [vmem:[%s1796_s25 + $0x138] sm:$0xff] }
  0x6d   : > { %972 = vmatprep.mubr.bf16.mxu1 %v444_v52  ;;  %v297_v23 = vld [vmem:[%s1796_s25 + $0x1d0] sm:$0xff]  ;;  %v2555_v44 = vmul.f32 %v1892_v0, %v289_v22  ;;  %v286_v8 = vld [vmem:[%s1796_s25 + $0x178] sm:$0xff]  ;;  %v400_v40 = vmul.f32 %v2225_v13, %v278_v7  ;;  %v605_v18 = vld [vmem:[%s2723_s0 + $0x3e0] sm:$0xff] }
  0x6e   : > { %959 = vmatpush1.bf16.msra.mxu1 %v771_v48  ;;  %v305_v38 = vld [vmem:[%s1796_s25 + $0x210] sm:$0xff]  ;;  %v459_v43 = vpack.c.bf16 %v2542_v30, %v2539_v29  ;;  %v2558_v48 = vmul.f32 %v1892_v0, %v297_v23  ;;  %v479_v52 = vpack.c.bf16 %v2548_v36, %v2545_v35  ;;  %v408_v41 = vmul.f32 %v2225_v13, %v286_v8  ;;  %v266_v27 = vld [vmem:[%s1796_s25 + $0xd8] sm:$0xff] }
  0x6f   : > { %1125 = vmatpush1.bf16.msra.mxu0 %v835_v49  ;;  %960 = vmatprep.subr.bf16.mxu1 %v774_v55  ;;  %v313_v39 = vld [vmem:[%s1796_s25 + $0x250] sm:$0xff]  ;;  %v2579_v56 = vmul.f32 %v1892_v0, %v305_v38  ;;  %v282_v12 = vld [vmem:[%s1796_s25 + $0x158] sm:$0xff] }
  0x70   : > { %1126 = vmatprep.subr.bf16.mxu0 %v838_v61  ;;  %v595_v49 = vld [vmem:[%s2723_s0 + $0x390] sm:$0xff]  ;;  %v467_v55 = vpack.c.bf16 %v2558_v48, %v2555_v44  ;;  %v2582_v57 = vmul.f32 %v1892_v0, %v313_v39  ;;  %v780_v61 = vpack.c.bf16 %v600_v21, %v598_v54  ;;  %v602_v0 = vld [vmem:[%s2723_s0 + $0x3c8] sm:$0xff]  ;;  %v380_v39 = vmul.f32 %v2230_v17, %v258_v25  ;;  %v318_v54 = vld [vmem:[%s1796_s25 + $0x278] sm:$0xff] }
  0x71   : > { %v777_v59 = vpack.c.bf16 %v595_v49, %v593_v37  ;;  %v599_v63 = vld [vmem:[%s2723_s0 + $0x3b0] sm:$0xff]  ;;  %v396_v21 = vmul.f32 %v2230_v17, %v274_v11  ;;  %v290_v45 = vld [vmem:[%s1796_s25 + $0x198] sm:$0xff] }
  0x72   : > { %961 = vmatpush1.bf16.msra.mxu1 %v773_v9  ;;  %v475_v28 = vpack.c.bf16 %v2582_v57, %v2579_v56  ;;  %v779_v9 = vpack.c.bf16 %v599_v63, %v597_v62  ;;  %v603_v15 = vld [vmem:[%s2723_s0 + $0x3d0] sm:$0xff]  ;;  %v440_v62 = vmul.f32 %v2225_v13, %v318_v54  ;;  %v412_v46 = vmul.f32 %v2230_v17, %v290_v45 }
  0x73   : > { %1127 = vmatpush1.bf16.msra.mxu0 %v837_v10  ;;  %962 = vmatprep.subr.bf16.mxu1 %v776_v16  ;;  %v782_v10 = vpack.c.bf16 %v604_v3, %v602_v0  ;;  %v781_v16 = vpack.c.bf16 %v603_v15, %v601_v14  ;;  %v607_v23 = vld [vmem:[%s2723_s0 + $0x3f0] sm:$0xff] }
  0x74   : > { %1128 = vmatprep.subr.bf16.mxu0 %v840_v24  ;;  %v464_v24 = vpack.c.bf16 %v408_v41, %v400_v40  ;;  %v783_v38 = vpack.c.bf16 %v607_v23, %v605_v18 }
  0x76   : > { %963 = vmatpush1.bf16.msra.mxu1 %v775_v32  ;;  %v294_v32 = vld [vmem:[%s1796_s25 + $0x1b8] sm:$0xff] }
  0x77   : > { %1129 = vmatpush1.bf16.msra.mxu0 %v839_v33  ;;  %964 = vmatprep.subr.bf16.mxu1 %v778_v42  ;;  %v302_v33 = vld [vmem:[%s1796_s25 + $0x1f8] sm:$0xff]  ;;  %v388_v42 = vmul.f32 %v2230_v17, %v266_v27  ;;  %v416_v37 = vmul.f32 %v2225_v13, %v294_v32 }
  0x78   : > { %v424_v49 = vmul.f32 %v2225_v13, %v302_v33 }
  0x79   : > { %v452_v50 = vpack.c.bf16 %v388_v42, %v380_v39 }
  0x7a   : > { %1139 = vmatmul.mubr.bf16.vlgmr.msra.gmra.mrb[0].mxu0 %v447_v53  ;;  %965 = vmatpush1.bf16.msra.mxu1 %v777_v59  ;;  %v606_v53 = vld [vmem:[%s2723_s0 + $0x3e8] sm:$0xff]  ;;  %v472_v51 = vpack.c.bf16 %v424_v49, %v416_v37  ;;  %v404_v59 = vmul.f32 %v2230_v17, %v282_v12 }
  0x7b   : > { %966 = vmatprep.subr.bf16.mxu1 %v780_v61  ;;  %1339 = vmatprep.mubr.msk.bf16.mxu0 %vm841_vm0, %v456_v1  ;;  %v784_v22 = vpack.c.bf16 %v608_v31, %v606_v53  ;;  %v314_v1 = vld [vmem:[%s1796_s25 + $0x258] sm:$0xff] }
  0x7c   : > { %v460_v63 = vpack.c.bf16 %v404_v59, %v396_v21  ;;  %v436_v4 = vmul.f32 %v2230_v17, %v314_v1 }
  0x7e   : > { %967 = vmatpush1.bf16.msra.mxu1 %v779_v9 }
  0x7f   : > { %968 = vmatprep.subr.bf16.mxu1 %v782_v10 }
  0x82   : > { %1149 = vmatmul.mubr.bf16.gmra.mrb[4].mxu0 %v455_v26  ;;  %969 = vmatpush1.bf16.msra.mxu1 %v781_v16  ;;  %v310_v26 = vld [vmem:[%s1796_s25 + $0x238] sm:$0xff] }
  0x83   : > { %970 = vmatprep.subr.bf16.mxu1 %v784_v22  ;;  %1340 = vmatprep.mubr.msk.bf16.mxu0 %vm841_vm0, %v464_v24  ;;  %v432_v61 = vmul.f32 %v2225_v13, %v310_v26 }
  0x85   : > { %v480_v34 = vpack.c.bf16 %v440_v62, %v432_v61 }
  0x86   : > { %971 = vmatpush1.bf16.msra.mxu1 %v783_v38 }
  0x89   : > { %973 = vmatmul.mubr.bf16.vlgmr.msra.gmra.mrb[0].mxu1 %v443_v58  ;;  %v298_v58 = vld [vmem:[%s1796_s25 + $0x1d8] sm:$0xff] }
  0x8a   : > { %1159 = vmatmul.mubr.bf16.gmra.mrb[8].mxu0 %v463_v60  ;;  %982 = vmatprep.mubr.bf16.mxu1 %v452_v50  ;;  %v420_v47 = vmul.f32 %v2230_v17, %v298_v58  ;;  %v306_v60 = vld [vmem:[%s1796_s25 + $0x218] sm:$0xff]  ;;  %s1346_s25 = sshll.u32 %s2733_s27, 4 }
  0x8b   : > { %1341 = vmatprep.mubr.msk.bf16.mxu0 %vm841_vm0, %v472_v51  ;;  %v428_v2 = vmul.f32 %v2230_v17, %v306_v60  ;;  %s2682_s10 = scalar_lea.vmem %s2726_s3, %s1346_s25 }
  0x8c   : > { %v468_v13 = vpack.c.bf16 %v420_v47, %v412_v46 }
  0x8d   : > { %v476_v5 = vpack.c.bf16 %v436_v4, %v428_v2 }
  0x91   : > { %983 = vmatmul.mubr.bf16.gmra.mrb[4].mxu1 %v451_v19 }
  0x92   : > { %1169 = vmatmul.mubr.bf16.gmra.mrb[12].mxu0 %v471_v20  ;;  %992 = vmatprep.mubr.bf16.mxu1 %v460_v63 }
  0x93   : > { %1342 = vmatprep.mubr.msk.bf16.mxu0 %vm841_vm0, %v480_v34 }
  0x99   : > { %993 = vmatmul.mubr.bf16.gmra.mrb[8].mxu1 %v459_v43 }
  0x9a   : > { %1179 = vmatmul.mubr.bf16.gmra.mrb[16].mxu0 %v479_v52  ;;  %1002 = vmatprep.mubr.bf16.mxu1 %v468_v13 }
  0xa1   : > { %1003 = vmatmul.mubr.bf16.gmra.mrb[12].mxu1 %v467_v55 }
  0xa2   : > { %1012 = vmatprep.mubr.bf16.mxu1 %v476_v5 }
  0xa9   : > { %1013 = vmatmul.mubr.bf16.gmra.mrb[16].mxu1 %v475_v28 }
 0x14d   : > { %v1140_v6 = vpop.f32.mrb[0].mxu0 }
 0x14e   : > { %v1142_v19 = vpop.f32.mrb[1].mxu0 }
 0x14f   : > { %v1144_v20 = vpop.f32.mrb[2].mxu0 }
 0x150   : > { %v1146_v29 = vpop.f32.mrb[3].mxu0 }
 0x155   : > { %v1150_v30 = vpop.f32.mrb[4].mxu0 }
 0x156   : > { %v1152_v35 = vpop.f32.mrb[5].mxu0 }
 0x157   : > { %v1154_v36 = vpop.f32.mrb[6].mxu0 }
 0x158   : > { %v1156_v43 = vpop.f32.mrb[7].mxu0 }
 0x15c   : > { %v974_v17 = vpop.f32.mrb[0].mxu1 }
 0x15d   : > { %v1347_v44 = vadd.f32 %v1140_v6, %v974_v17  ;;  %v1160_v48 = vpop.f32.mrb[8].mxu0  ;;  %v976_v52 = vpop.f32.mrb[1].mxu1 }
 0x15e   : > { %v1348_v55 = vadd.f32 %v1142_v19, %v976_v52  ;;  %v1162_v56 = vpop.f32.mrb[9].mxu0  ;;  %v978_v57 = vpop.f32.mrb[2].mxu1 }
 0x15f   : > { %1189 = vst [vmem:[%s2682_s10] sm:$0xff] %v1347_v44  ;;  %v1349_v28 = vadd.f32 %v1144_v20, %v978_v57  ;;  %v1164_v0 = vpop.f32.mrb[10].mxu0  ;;  %v980_v3 = vpop.f32.mrb[3].mxu1 }
 0x160   : > { %1191 = vst.msk [vmem:[%s2682_s10 + $0x8] sm:$0xff] %vm1190_vm1, %v1348_v55  ;;  %v1350_v7 = vadd.f32 %v1146_v29, %v980_v3  ;;  %v1166_v8 = vpop.f32.mrb[11].mxu0 }
 0x161   : > { %1192 = vst [vmem:[%s2682_s10 + $0x10] sm:$0xff] %v1349_v28 }
 0x162   : > { %1193 = vst.msk [vmem:[%s2682_s10 + $0x18] sm:$0xff] %vm1190_vm1, %v1350_v7 }
 0x164   : > { %v984_v9 = vpop.f32.mrb[4].mxu1 }
 0x165   : > { %v1351_v10 = vadd.f32 %v1150_v30, %v984_v9  ;;  %v1170_v14 = vpop.f32.mrb[12].mxu0  ;;  %v986_v15 = vpop.f32.mrb[5].mxu1 }
 0x166   : > { %v1352_v40 = vadd.f32 %v1152_v35, %v986_v15  ;;  %v1172_v41 = vpop.f32.mrb[13].mxu0  ;;  %v988_v53 = vpop.f32.mrb[6].mxu1 }
 0x167   : > { %1194 = vst [vmem:[%s2682_s10 + $0x20] sm:$0xff] %v1351_v10  ;;  %v1353_v31 = vadd.f32 %v1154_v36, %v988_v53  ;;  %v1174_v16 = vpop.f32.mrb[14].mxu0  ;;  %v990_v18 = vpop.f32.mrb[7].mxu1 }
 0x168   : > { %1195 = vst.msk [vmem:[%s2682_s10 + $0x28] sm:$0xff] %vm1190_vm1, %v1352_v40  ;;  %v1354_v22 = vadd.f32 %v1156_v43, %v990_v18  ;;  %v1176_v23 = vpop.f32.mrb[15].mxu0 }
 0x169   : > { %1196 = vst [vmem:[%s2682_s10 + $0x30] sm:$0xff] %v1353_v31 }
 0x16a   : > { %1197 = vst.msk [vmem:[%s2682_s10 + $0x38] sm:$0xff] %vm1190_vm1, %v1354_v22 }
 0x16c   : > { %v994_v24 = vpop.f32.mrb[8].mxu1 }
 0x16d   : > { %v1355_v25 = vadd.f32 %v1160_v48, %v994_v24  ;;  %v1180_v27 = vpop.f32.mrb[16].mxu0  ;;  %v996_v32 = vpop.f32.mrb[9].mxu1 }
 0x16e   : > { %v1356_v33 = vadd.f32 %v1162_v56, %v996_v32  ;;  %v1182_v38 = vpop.f32.mrb[17].mxu0  ;;  %v998_v39 = vpop.f32.mrb[10].mxu1 }
 0x16f   : > { %1198 = vst [vmem:[%s2682_s10 + $0x40] sm:$0xff] %v1355_v25  ;;  %v1357_v42 = vadd.f32 %v1164_v0, %v998_v39  ;;  %v1184_v37 = vpop.f32.mrb[18].mxu0  ;;  %v1000_v49 = vpop.f32.mrb[11].mxu1 }
 0x170   : > { %1199 = vst.msk [vmem:[%s2682_s10 + $0x48] sm:$0xff] %vm1190_vm1, %v1356_v33  ;;  %v1358_v50 = vadd.f32 %v1166_v8, %v1000_v49  ;;  %v1186_v51 = vpop.f32.mrb[19].mxu0 }
 0x171   : > { %1200 = vst [vmem:[%s2682_s10 + $0x50] sm:$0xff] %v1357_v42 }
 0x172   : > { %1201 = vst.msk [vmem:[%s2682_s10 + $0x58] sm:$0xff] %vm1190_vm1, %v1358_v50 }
 0x174   : > { %v1004_v11 = vpop.f32.mrb[12].mxu1 }
 0x175   : > { %v1359_v12 = vadd.f32 %v1170_v14, %v1004_v11  ;;  %v1006_v26 = vpop.f32.mrb[13].mxu1 }
 0x176   : > { %v1360_v54 = vadd.f32 %v1172_v41, %v1006_v26  ;;  %v1008_v21 = vpop.f32.mrb[14].mxu1 }
 0x177   : > { %1202 = vst [vmem:[%s2682_s10 + $0x60] sm:$0xff] %v1359_v12  ;;  %v1361_v59 = vadd.f32 %v1174_v16, %v1008_v21  ;;  %v1010_v61 = vpop.f32.mrb[15].mxu1 }
 0x178   : > { %1203 = vst.msk [vmem:[%s2682_s10 + $0x68] sm:$0xff] %vm1190_vm1, %v1360_v54  ;;  %v1362_v62 = vadd.f32 %v1176_v23, %v1010_v61 }
 0x179   : > { %1204 = vst [vmem:[%s2682_s10 + $0x70] sm:$0xff] %v1361_v59 }
 0x17a   : > { %1205 = vst.msk [vmem:[%s2682_s10 + $0x78] sm:$0xff] %vm1190_vm1, %v1362_v62 }
 0x17c   : > { %v1014_v63 = vpop.f32.mrb[16].mxu1 }
 0x17d   : > { %v1363_v34 = vadd.f32 %v1180_v27, %v1014_v63  ;;  %v1016_v45 = vpop.f32.mrb[17].mxu1 }
 0x17e   : > { %v1364_v58 = vadd.f32 %v1182_v38, %v1016_v45  ;;  %v1018_v46 = vpop.f32.mrb[18].mxu1 }
 0x17f   : > { %1206 = vst [vmem:[%s2682_s10 + $0x80] sm:$0xff] %v1363_v34  ;;  %v1365_v47 = vadd.f32 %v1184_v37, %v1018_v46  ;;  %v1020_v13 = vpop.f32.mrb[19].mxu1 }
 0x180   : > { %1207 = vst.msk [vmem:[%s2682_s10 + $0x88] sm:$0xff] %vm1190_vm1, %v1364_v58  ;;  %v1366_v60 = vadd.f32 %v1186_v51, %v1020_v13 }
 0x181   : > { %1208 = vst [vmem:[%s2682_s10 + $0x90] sm:$0xff] %v1365_v47 }
 0x182   : > { %1209 = vst.msk [vmem:[%s2682_s10 + $0x98] sm:$0xff] %vm1190_vm1, %v1366_v60 }
 0x183 PF: > { %s13_s14 = sadd.s32 1, %s1453_s14   ;;  %s2728_s12 = smov %s1449_s13 }
 0x184   : > { %p10_p5 = scmp.ge.s32.totalorder %s13_s14, 4   ;;  %s2729_s13 = smov %s2731_s15 }
 0x186   :  { %12 = sbr.rel (!%p10_p5) target bundleno = 2 (0x2), region = 68 }

</bundles_post_ra>
